<compile_context>
chip_gen: v6e
topology: v6e:2x2x1
jax: 0.10.0
libtpu: 0.0.40
codegen_flags: <defaults>
</compile_context>

<pallas_src>
import jax
import jax.numpy as jnp
from jax.experimental import pallas as pl
from jax.experimental.pallas import tpu as pltpu


def _round_up(x, m):
    return ((x + m - 1) // m) * m


def bmf_kernel(at_ref, bt_ref, vi_ref, hi_ref, bias_ref, o_ref):
    """Fused gather + bilinear reduce + sigmoid for one batch tile.

    at_ref: (D, Nv_pad) f32  virus table, transposed, affine weight folded in
    bt_ref: (D, Nh_pad) f32  human table, transposed
    vi_ref, hi_ref: (1, TB) int32 index tiles
    bias_ref: (1, 1) f32 in SMEM
    o_ref: (1, TB) f32 lane-dense output tile
    """
    _, nv = at_ref.shape
    _, nh = bt_ref.shape
    tb = vi_ref.shape[1]

    vi = vi_ref[...]                                   # (1, TB) int32
    hi = hi_ref[...]

    # One-hot row selection on the (otherwise idle) MXU: each output lane picks
    # exactly one table column, so the result is f32-exact with HIGHEST prec.
    row_v = jax.lax.broadcasted_iota(jnp.int32, (nv, tb), 0)
    row_h = jax.lax.broadcasted_iota(jnp.int32, (nh, tb), 0)
    ov = (row_v == vi).astype(jnp.float32)             # (Nv_pad, TB)
    oh = (row_h == hi).astype(jnp.float32)             # (Nh_pad, TB)
    ga = jnp.dot(at_ref[...], ov,
                 preferred_element_type=jnp.float32,
                 precision=jax.lax.Precision.HIGHEST)  # (D, TB) gathered virus rows
    gb = jnp.dot(bt_ref[...], oh,
                 preferred_element_type=jnp.float32,
                 precision=jax.lax.Precision.HIGHEST)  # (D, TB) gathered human rows

    # Bilinear product (affine weight already folded into ga) -> sublane reduce.
    logits = jnp.sum(ga * gb, axis=0, keepdims=True) + bias_ref[0, 0]   # (1, TB)
    o_ref[...] = jax.nn.sigmoid(logits)                                 # EUP, lane-dense


def precombine_tables(virus_emb, vfeats, human_emb, hfeats, w):
    """Fold the affine weight and per-table products (once per weight update).

    Returns tables transposed to (D, N) with the entity axis zero-padded to a
    multiple of 128 so the in-kernel one-hot gather is lane-aligned.
    """
    At = (virus_emb * vfeats * w.reshape(1, -1)).T      # (D, num_virus)
    Bt = (human_emb * hfeats).T                         # (D, num_human)
    nv_pad = _round_up(At.shape[1], 128)
    nh_pad = _round_up(Bt.shape[1], 128)
    At = jnp.pad(At, ((0, 0), (0, nv_pad - At.shape[1])))
    Bt = jnp.pad(Bt, ((0, 0), (0, nh_pad - Bt.shape[1])))
    return At, Bt


def bmf_forward(At_tab, Bt_tab, bias, v_idxs, h_idxs, *, tb_cap=8192):
    """At_tab: (D, Nv_pad), Bt_tab: (D, Nh_pad) f32 (from precombine_tables),
    bias: (1, 1) f32, v_idxs/h_idxs: (B,) int32.  Returns sigmoid logits (B, 1)."""
    D, nv_pad = At_tab.shape
    _, nh_pad = Bt_tab.shape
    Bsz = v_idxs.shape[0]

    # Lane tile: multiple of 128, aim for multiple grid steps on large batches
    # (v7x shards the "parallel" axis across its 2 TensorCores) while staying
    # >= 512 lanes to amortize per-step overhead on v5e/v6e.
    b128 = _round_up(max(Bsz, 128), 128)
    target = max(512, ((b128 // 8) // 128) * 128)
    tb = max(128, min(tb_cap, target, b128))
    Bp = _round_up(Bsz, tb)

    # Pad only the index vectors (cheap), never gathered (D, B) matrices.
    vi = jnp.pad(v_idxs.astype(jnp.int32), (0, Bp - Bsz)).reshape(1, Bp)
    hi = jnp.pad(h_idxs.astype(jnp.int32), (0, Bp - Bsz)).reshape(1, Bp)

    grid = (Bp // tb,)
    out = pl.pallas_call(
        bmf_kernel,
        out_shape=jax.ShapeDtypeStruct((1, Bp), jnp.float32),
        grid=grid,
        in_specs=[
            pl.BlockSpec((D, nv_pad), lambda i: (0, 0)),            # resident virus table
            pl.BlockSpec((D, nh_pad), lambda i: (0, 0)),            # resident human table
            pl.BlockSpec((1, tb), lambda i: (0, i)),                # virus idx tile
            pl.BlockSpec((1, tb), lambda i: (0, i)),                # human idx tile
            pl.BlockSpec(memory_space=pltpu.MemorySpace.SMEM),      # bias scalar
        ],
        out_specs=pl.BlockSpec((1, tb), lambda i: (0, i)),          # lane-dense (1, TB)
        compiler_params=pltpu.CompilerParams(
            dimension_semantics=("parallel",)),
    )(At_tab, Bt_tab, vi, hi, bias)

    return out[:, :Bsz].T                                           # (B, 1)


def _reference(virus_emb, vfeats, human_emb, hfeats, w, b, v_idxs, h_idxs):
    U = jnp.take(virus_emb, v_idxs, axis=0)
    x = jnp.take(vfeats, v_idxs, axis=0)
    V = jnp.take(human_emb, h_idxs, axis=0)
    y = jnp.take(hfeats, h_idxs, axis=0)
    return jax.nn.sigmoid((x * U * V * y) @ w.T + b[0, 0])


if __name__ == "__main__":
    # config: small synthetic shapes consistent with the module
    num_virus = 10
    num_human = 12
    latent_dim = 32

    key = jax.random.PRNGKey(0)
    k_virus, k_human, k_vfeat, k_hfeat, k_w, k_b, k_vi, k_hi = jax.random.split(key, 8)

    # nn.Embedding weights, init.normal_  -> standard normal
    virus_emb = jax.random.normal(k_virus, (num_virus, latent_dim), jnp.float32)
    human_emb = jax.random.normal(k_human, (num_human, latent_dim), jnp.float32)
    # "pretrained" feature embeddings (loadAsEmbeddings) -- synthetic, same dim
    vfeats = jax.random.normal(k_vfeat, (num_virus, latent_dim), jnp.float32)
    hfeats = jax.random.normal(k_hfeat, (num_human, latent_dim), jnp.float32)
    # affine_output: Linear(latent_dim, 1), xavier_normal_ weight
    xavier_std = (2.0 / (latent_dim + 1)) ** 0.5
    w = xavier_std * jax.random.normal(k_w, (1, latent_dim), jnp.float32)
    bound = 1.0 / (latent_dim ** 0.5)
    b = jax.random.uniform(k_b, (1, 1), jnp.float32, minval=-bound, maxval=bound)

    # fold weight + per-table products once (amortized per weight update)
    At_tab, Bt_tab = precombine_tables(virus_emb, vfeats, human_emb, hfeats, w)

    # --- case 1: tiny batch (padded to one 128-lane tile) ---
    batch = 8
    v_idxs = jax.random.randint(k_vi, (batch,), 0, num_virus, dtype=jnp.int32)
    h_idxs = jax.random.randint(k_hi, (batch,), 0, num_human, dtype=jnp.int32)
    out = jax.block_until_ready(bmf_forward(At_tab, Bt_tab, b, v_idxs, h_idxs))
    ref = _reference(virus_emb, vfeats, human_emb, hfeats, w, b, v_idxs, h_idxs)
    assert out.shape == (batch, 1)
    assert jnp.allclose(out, ref, atol=1e-5, rtol=1e-5)

    # --- case 2: non-aligned batch (exercises index padding) ---
    batch2 = 200
    k_vi2, k_hi2 = jax.random.split(k_vi)
    v_idxs2 = jax.random.randint(k_vi2, (batch2,), 0, num_virus, dtype=jnp.int32)
    h_idxs2 = jax.random.randint(k_hi2, (batch2,), 0, num_human, dtype=jnp.int32)
    out2 = jax.block_until_ready(bmf_forward(At_tab, Bt_tab, b, v_idxs2, h_idxs2))
    ref2 = _reference(virus_emb, vfeats, human_emb, hfeats, w, b, v_idxs2, h_idxs2)
    assert out2.shape == (batch2, 1)
    assert jnp.allclose(out2, ref2, atol=1e-5, rtol=1e-5)

    # --- case 3: larger batch (exercises multi-step grid / megacore path) ---
    batch3 = 3000
    k_vi3, k_hi3 = jax.random.split(k_hi)
    v_idxs3 = jax.random.randint(k_vi3, (batch3,), 0, num_virus, dtype=jnp.int32)
    h_idxs3 = jax.random.randint(k_hi3, (batch3,), 0, num_human, dtype=jnp.int32)
    out3 = jax.block_until_ready(bmf_forward(At_tab, Bt_tab, b, v_idxs3, h_idxs3))
    ref3 = _reference(virus_emb, vfeats, human_emb, hfeats, w, b, v_idxs3, h_idxs3)
    assert out3.shape == (batch3, 1)
    assert jnp.allclose(out3, ref3, atol=1e-5, rtol=1e-5)

    print("KERNEL_OK")
</pallas_src>

<mosaic_0001>
module attributes {stable_mosaic.version = 11 : i64} {
  func.func @bmf_kernel(%arg0: i32, %arg1: memref<32x128xf32, #tpu.memory_space<vmem>>, %arg2: memref<32x128xf32, #tpu.memory_space<vmem>>, %arg3: memref<1x128xi32, #tpu.memory_space<vmem>>, %arg4: memref<1x128xi32, #tpu.memory_space<vmem>>, %arg5: memref<1x1xf32, #tpu.memory_space<smem>>, %arg6: memref<1x128xf32, #tpu.memory_space<vmem>>) attributes {dimension_semantics = [#tpu.dimension_semantics<parallel>], iteration_bounds = array<i64: 1>, scalar_prefetch = 0 : i64, scratch_operands = 0 : i64, tpu.core_type = #tpu.core_type<tc>, window_params = [{pipeline_mode = #tpu.pipeline_mode<synchronous>, transform_indices = @transform_0, window_bounds = array<i64: 32, 128>}, {pipeline_mode = #tpu.pipeline_mode<synchronous>, transform_indices = @transform_1, window_bounds = array<i64: 32, 128>}, {transform_indices = @transform_2, window_bounds = array<i64: 1, 128>}, {transform_indices = @transform_3, window_bounds = array<i64: 1, 128>}, {transform_indices = @transform_4, window_bounds = array<i64: 1, 1>}, {transform_indices = @transform_5, window_bounds = array<i64: 1, 128>}]} {
    %c0 = arith.constant 0 : index
    %c0_0 = arith.constant 0 : index
    %0 = vector.load %arg3[%c0, %c0_0] : memref<1x128xi32, #tpu.memory_space<vmem>>, vector<1x128xi32>
    %c0_1 = arith.constant 0 : index
    %c0_2 = arith.constant 0 : index
    %1 = vector.load %arg4[%c0_1, %c0_2] : memref<1x128xi32, #tpu.memory_space<vmem>>, vector<1x128xi32>
    %2 = tpu.iota {dimensions = array<i32: 0>} : vector<128x128xi32>
    %3 = tpu.iota {dimensions = array<i32: 0>} : vector<128x128xi32>
    %4 = vector.broadcast %0 : vector<1x128xi32> to vector<128x128xi32>
    %5 = arith.cmpi eq, %2, %4 : vector<128x128xi32>
    %6 = arith.extui %5 : vector<128x128xi1> to vector<128x128xi32>
    %7 = arith.sitofp %6 : vector<128x128xi32> to vector<128x128xf32>
    %8 = vector.broadcast %1 : vector<1x128xi32> to vector<128x128xi32>
    %9 = arith.cmpi eq, %3, %8 : vector<128x128xi32>
    %10 = arith.extui %9 : vector<128x128xi1> to vector<128x128xi32>
    %11 = arith.sitofp %10 : vector<128x128xi32> to vector<128x128xf32>
    %c0_3 = arith.constant 0 : index
    %c0_4 = arith.constant 0 : index
    %12 = vector.load %arg1[%c0_3, %c0_4] : memref<32x128xf32, #tpu.memory_space<vmem>>, vector<32x128xf32>
    %cst = arith.constant dense<0.000000e+00> : vector<32x128xf32>
    %13 = tpu.matmul %12, %7, %cst {dimension_numbers = #tpu.dot_dimension_numbers<[1], [0], [0], [1], [0, 0, 1, 1], [], []>, precision = #tpu.contract_precision<fp32>} : vector<32x128xf32>, vector<128x128xf32>, vector<32x128xf32> -> vector<32x128xf32>
    %c0_5 = arith.constant 0 : index
    %c0_6 = arith.constant 0 : index
    %14 = vector.load %arg2[%c0_5, %c0_6] : memref<32x128xf32, #tpu.memory_space<vmem>>, vector<32x128xf32>
    %cst_7 = arith.constant dense<0.000000e+00> : vector<32x128xf32>
    %15 = tpu.matmul %14, %11, %cst_7 {dimension_numbers = #tpu.dot_dimension_numbers<[1], [0], [0], [1], [0, 0, 1, 1], [], []>, precision = #tpu.contract_precision<fp32>} : vector<32x128xf32>, vector<128x128xf32>, vector<32x128xf32> -> vector<32x128xf32>
    %16 = arith.mulf %13, %15 : vector<32x128xf32>
    %cst_8 = arith.constant dense<0.000000e+00> : vector<128xf32>
    %17 = vector.multi_reduction <add>, %16, %cst_8 [0] : vector<32x128xf32> to vector<128xf32>
    %18 = vector.shape_cast %17 : vector<128xf32> to vector<1x128xf32>
    %c0_9 = arith.constant 0 : index
    %c0_10 = arith.constant 0 : index
    %19 = memref.load %arg5[%c0_9, %c0_10] : memref<1x1xf32, #tpu.memory_space<smem>>
    %20 = vector.broadcast %19 : f32 to vector<1x128xf32>
    %21 = arith.addf %18, %20 : vector<1x128xf32>
    %22 = arith.negf %21 : vector<1x128xf32>
    %23 = math.exp %22 : vector<1x128xf32>
    %cst_11 = arith.constant 1.000000e+00 : f32
    %24 = vector.broadcast %cst_11 : f32 to vector<1x128xf32>
    %25 = arith.addf %24, %23 : vector<1x128xf32>
    %26 = arith.divf %24, %25 : vector<1x128xf32>
    %c0_12 = arith.constant 0 : index
    %c0_13 = arith.constant 0 : index
    %27 = vector.load %arg6[%c0_12, %c0_13] : memref<1x128xf32, #tpu.memory_space<vmem>>, vector<1x128xf32>
    tpu.vector_store %arg6[%c0_12, %c0_13], %26 {strides = array<i32>} : memref<1x128xf32, #tpu.memory_space<vmem>>, vector<1x128xf32>,
    return
  }
  func.func @transform_0(%arg0: i32) -> (i32, i32) {
    %c0_i32 = arith.constant 0 : i32
    %c0_i32_0 = arith.constant 0 : i32
    %c0_i32_1 = arith.constant 0 : i32
    return %c0_i32, %c0_i32_0 : i32, i32
  }
  func.func @transform_1(%arg0: i32) -> (i32, i32) {
    %c0_i32 = arith.constant 0 : i32
    %c0_i32_0 = arith.constant 0 : i32
    %c0_i32_1 = arith.constant 0 : i32
    return %c0_i32, %c0_i32_0 : i32, i32
  }
  func.func @transform_2(%arg0: i32) -> (i32, i32) {
    %c0_i32 = arith.constant 0 : i32
    %c0_i32_0 = arith.constant 0 : i32
    return %c0_i32, %arg0 : i32, i32
  }
  func.func @transform_3(%arg0: i32) -> (i32, i32) {
    %c0_i32 = arith.constant 0 : i32
    %c0_i32_0 = arith.constant 0 : i32
    return %c0_i32, %arg0 : i32, i32
  }
  func.func @transform_4(%arg0: i32) -> (i32, i32) {
    %c0_i32 = arith.constant 0 : i32
    %c0_i32_0 = arith.constant 0 : i32
    %c0_i32_1 = arith.constant 0 : i32
    return %c0_i32, %c0_i32_0 : i32, i32
  }
  func.func @transform_5(%arg0: i32) -> (i32, i32) {
    %c0_i32 = arith.constant 0 : i32
    %c0_i32_0 = arith.constant 0 : i32
    return %c0_i32, %arg0 : i32, i32
  }
}

</mosaic_0001>

<bundles_post_ra>
// kernel: tpu_custom_call.1
= control target key start
LH: loop header
LB: loop body
LE: loop exit
PB: predicated region body
PF: predicated region fallthrough
CT: control target
= control target key end

     0   :  { %11 = vsyncpa [#allocation4], 0  ;;  %s4112_s0 = inlined_call_operand.hbm [shape: f32[32,128], index: 0, kind: input, shape index: {}]   ;;  %s4113_s1 = inlined_call_operand.hbm [shape: f32[32,128], index: 1, kind: input, shape index: {}]   ;;  %s4114_s2 = inlined_call_operand.vmem [shape: s32[1,128], index: 2, kind: input, shape index: {}]   ;;  %s4115_s3 = inlined_call_operand.vmem [shape: s32[1,128], index: 3, kind: input, shape index: {}]   ;;  %s4116_s4 = inlined_call_operand.<no memory space> [shape: f32[1,1], index: 4, kind: input, shape index: {}]   ;;  %s4117_s5 = inlined_call_operand.hbm [shape: f32[1,128], index: 5, kind: output, shape index: {}]  }
   0x1   :  { %12 = vsyncpa [#allocation7], 0 }
   0x2   :  { %13 = vsyncpa [#allocation5], 0  ;;  %s2664_s18 = smov [#allocation3]  }
   0x3   :  { %s19_s19 = sshll.u32 %s2664_s18, 4  ;;  %s20_s19 = int_to_ptr.vmem [resolvable:$true] %s19_s19 }
   0x4   :  { %s2606_s20 = scalar_lea.vmem %s20_s19, 512  ;;  %p2611_p1 = scmp.lt.s32.totalorder %s20_s19, %s20_s19 }
   0x5   :  { %p2607_p0 = scmp.ne.s32.totalorder %s20_s19, %s2606_s20  ;;  %p2612_p2 = scmp.lt.s32.totalorder %s2606_s20, %s2606_s20 }
   0x7   :  { %p2613_p3 = por %p2612_p2, %p2611_p1 }
   0x9   :  { %p2614_p4 = pnand %p2613_p3, %p2607_p0 }
   0xb   :  { %2617 = shalt.err (!%p2614_p4)
}
   0xc   :  { %s2665_s21 = smov 128   ;;  %s2666_s22 = smov 8  }
   0xd   :  { %25 = dma.hbm_to_vmem [thread:$0]  %s4112_s0, 512, %s20_s19, [#allocation4], %s2665_s21, %s2665_s21, %s2666_s22  }
   0xe   :  { %s2667_s25 = smov [#allocation6]  }
   0xf   :  { %s31_s26 = sshll.u32 %s2667_s25, 4  ;;  %s32_s26 = int_to_ptr.vmem [resolvable:$true] %s31_s26 }
  0x10   :  { %s2626_s27 = scalar_lea.vmem %s32_s26, 512  ;;  %p2631_p6 = scmp.lt.s32.totalorder %s32_s26, %s32_s26 }
  0x11   :  { %p2627_p5 = scmp.ne.s32.totalorder %s32_s26, %s2626_s27  ;;  %p2632_p7 = scmp.lt.s32.totalorder %s2626_s27, %s2626_s27 }
  0x13   :  { %p2633_p8 = por %p2632_p7, %p2631_p6 }
  0x15   :  { %p2634_p9 = pnand %p2633_p8, %p2627_p5 }
  0x17   :  { %2637 = shalt.err (!%p2634_p9)
}
  0x18   :  { %37 = dma.hbm_to_vmem [thread:$0]  %s4113_s1, 512, %s32_s26, [#allocation7], %s2665_s21, %s2665_s21, %s2666_s22  }
  0x19   :  { %2658 = dma.done.wait [#allocation4], 512  }
  0x1a   :  { %2659 = vsyncadd [#allocation4], 4294966784 }
  0x1b   :  { %2660 = dma.done.wait [#allocation7], 512  }
  0x1c   :  { %2661 = vsyncadd [#allocation7], 4294966784  ;;  %v52_v0 = vlaneseq  ;;  %v2733_v9 = vld [vmem:[%s4114_s2] ss:$0 sm:$0xff]  ;;  %v2668_v18 = vmov 1.0   ;;  %v4118_v20 = vmov 0.0  }
  0x1d   :  { %s2670_s7 = smov [#allocation8]  }
  0x1e   :  { %v2707_v1 = vshrl.u32 %v52_v0, 7  ;;  %s1750_s8 = sshll.u32 %s2670_s7, 4  ;;  %s1751_s8 = int_to_ptr.vmem [resolvable:$true] %s1750_s8 }
  0x1f   :  { %s2638_s9 = scalar_lea.vmem %s1751_s8, 16  ;;  %s2642_s10 = scalar_lea.vmem %s1751_s8, 32 }
  0x20   :  { %4137 = vst [vmem:[#allocation12_spill] sm:$0xff] %v2707_v1  ;;  %v2710_v2 = vadd.s32 120, %v2707_v1  ;;  %v2713_v3 = vadd.s32 112, %v2707_v1  ;;  %v2716_v4 = vadd.s32 104, %v2707_v1  ;;  %v2719_v5 = vadd.s32 96, %v2707_v1  ;;  %p2639_p10 = scmp.ne.s32.totalorder %s1751_s8, %s2638_s9  ;;  %p2643_p11 = scmp.lt.s32.totalorder %s1751_s8, %s1751_s8 }
  0x21   :  { %v2722_v6 = vadd.s32 88, %v2707_v1  ;;  %v2725_v7 = vadd.s32 80, %v2707_v1  ;;  %v2728_v8 = vadd.s32 72, %v2707_v1  ;;  %v2736_v10 = vadd.s32 64, %v2707_v1  ;;  %p2644_p12 = scmp.lt.s32.totalorder %s2642_s10, %s2638_s9 }
  0x22   :  { %4138 = vst [vmem:[#allocation13_spill] sm:$0xff] %v2713_v3  ;;  %4139 = vst [vmem:[#allocation14_spill] sm:$0xff] %v2716_v4  ;;  %v2739_v11 = vadd.s32 56, %v2707_v1  ;;  %v2742_v12 = vadd.s32 48, %v2707_v1  ;;  %v2745_v13 = vadd.s32 40, %v2707_v1  ;;  %vm2749_vm0 = vcmp.eq.s32.totalorder %v2710_v2, %v2733_v9 }
  0x23   :  { %4140 = vst [vmem:[#allocation15_spill] sm:$0xff] %v2719_v5  ;;  %4141 = vst [vmem:[#allocation16_spill] sm:$0xff] %v2722_v6  ;;  %vm2755_vm1 = vcmp.eq.s32.totalorder %v2713_v3, %v2733_v9  ;;  %vm2761_vm2 = vcmp.eq.s32.totalorder %v2716_v4, %v2733_v9  ;;  %vm2767_vm3 = vcmp.eq.s32.totalorder %v2719_v5, %v2733_v9  ;;  %2131 = vmatprep.subr.msk.mxu0 %vm2749_vm0, %v2668_v18  ;;  %p2645_p13 = por %p2644_p12, %p2643_p11 }
  0x24   :  { %4142 = vst [vmem:[#allocation17_spill] sm:$0xff] %v2725_v7  ;;  %4143 = vst [vmem:[#allocation18_spill] sm:$0xff] %v2728_v8  ;;  %vm2776_vm4 = vcmp.eq.s32.totalorder %v2722_v6, %v2733_v9  ;;  %v1776_v21 = vsel %vm2749_vm0, 1.0, %v4118_v20  ;;  %v1775_v22 = vsel %vm2755_vm1, 1.0, %v4118_v20  ;;  %v2787_v23 = vadd.s32 32, %v2707_v1  ;;  %2132 = vmatpush3.msk.msra.mxu0 %vm2749_vm0, %v2668_v18 }
  0x25   :  { %4144 = vst [vmem:[#allocation19_spill] sm:$0xff] %v2736_v10  ;;  %4145 = vst [vmem:[#allocation20_spill] sm:$0xff] %v2739_v11  ;;  %v2792_v24 = vsub.f32 %v1776_v21, %v1776_v21  ;;  %vm2796_vm5 = vcmp.eq.s32.totalorder %v2725_v7, %v2733_v9  ;;  %v2800_v26 = vsub.f32 %v1775_v22, %v1775_v22  ;;  %v1774_v27 = vsel %vm2761_vm2, 1.0, %v4118_v20  ;;  %p2646_p0 = pnand %p2645_p13, %p2639_p10 }
  0x26   :  { %4146 = vst [vmem:[#allocation21_spill] sm:$0xff] %v2742_v12  ;;  %4147 = vst [vmem:[#allocation22_spill] sm:$0xff] %v2745_v13  ;;  %2133 = vmatprep.subr.msk.mxu0 %vm2755_vm1, %v2668_v18  ;;  %vm2810_vm6 = vcmp.eq.s32.totalorder %v2728_v8, %v2733_v9  ;;  %v2814_v29 = vsub.f32 %v1774_v27, %v1774_v27  ;;  %v1773_v30 = vsel %vm2767_vm3, 1.0, %v4118_v20  ;;  %v2820_v31 = vadd.s32 24, %v2707_v1 }
  0x27   :  { %4158 = vst [vmem:[#allocation23_spill] sm:$0xff] %v2787_v23  ;;  %2134 = vmatpush3.msk.msra.mxu0 %vm2755_vm1, %v2668_v18  ;;  %v2826_v32 = vand.u32 4294901760, %v2792_v24  ;;  %v2829_v33 = vand.u32 4294901760, %v2800_v26  ;;  %v2831_v34 = vsub.f32 %v1773_v30, %v1773_v30  ;;  %v1772_v35 = vsel %vm2776_vm4, 1.0, %v4118_v20 }
  0x28   :  { %4163 = vst [vmem:[#allocation24_spill] sm:$0xff] %v2820_v31  ;;  %2135 = vmatprep.subr.msk.mxu0 %vm2761_vm2, %v2668_v18  ;;  %v2840_v36 = vand.u32 4294901760, %v2814_v29  ;;  %vm2844_vm7 = vcmp.eq.s32.totalorder %v2736_v10, %v2733_v9  ;;  %v2848_v38 = vsub.f32 %v1772_v35, %v1772_v35  ;;  %v1771_v39 = vsel %vm2796_vm5, 1.0, %v4118_v20 }
  0x29   :  { %2136 = vmatpush3.msk.msra.mxu0 %vm2761_vm2, %v2668_v18  ;;  %v302_v40 = vsub.f32 %v2792_v24, %v2826_v32  ;;  %v309_v41 = vsub.f32 %v2800_v26, %v2829_v33  ;;  %v2861_v42 = vand.u32 4294901760, %v2831_v34  ;;  %v2863_v43 = vsub.f32 %v1771_v39, %v1771_v39  ;;  %v4191_v15 = vld [vmem:[#allocation13_spill] sm:$0xff]  ;;  %v4195_v19 = vld [vmem:[#allocation14_spill] sm:$0xff] }
  0x2a   :  { %2137 = vmatprep.subr.msk.mxu0 %vm2767_vm3, %v2668_v18  ;;  %v316_v44 = vsub.f32 %v2814_v29, %v2840_v36  ;;  %vm2872_vm8 = vcmp.eq.s32.totalorder %v2739_v11, %v2733_v9  ;;  %v2877_v46 = vand.u32 4294901760, %v2848_v38  ;;  %v1770_v47 = vsel %vm2810_vm6, 1.0, %v4118_v20 }
  0x2b   :  { %2138 = vmatpush3.msk.msra.mxu0 %vm2767_vm3, %v2668_v18  ;;  %v303_v48 = vand.u32 4294901760, %v302_v40  ;;  %v310_v49 = vand.u32 4294901760, %v309_v41  ;;  %v323_v50 = vsub.f32 %v2831_v34, %v2861_v42  ;;  %v2888_v51 = vand.u32 4294901760, %v2863_v43  ;;  %v173_v41 = vld [vmem:[#allocation3] sm:$0xff]  ;;  %v4207_v58 = vld [vmem:[#allocation18_spill] sm:$0xff] }
  0x2c   :  { %2139 = vmatprep.subr.msk.mxu0 %vm2776_vm4, %v2668_v18  ;;  %vm2895_vm9 = vcmp.eq.s32.totalorder %v2742_v12, %v2733_v9  ;;  %vm2901_vm10 = vcmp.eq.s32.totalorder %v2745_v13, %v2733_v9  ;;  %v2905_v54 = vsub.f32 %v1770_v47, %v1770_v47  ;;  %v2908_v55 = vadd.s32 16, %v2707_v1 }
  0x2d   :  { %2140 = vmatpush3.msk.msra.mxu0 %vm2776_vm4, %v2668_v18  ;;  %2169 = vmatprep.subr.mxu1 %v303_v48  ;;  %v317_v56 = vand.u32 4294901760, %v316_v44  ;;  %v330_v57 = vsub.f32 %v2848_v38, %v2877_v46  ;;  %vm2917_vm11 = vcmp.eq.s32.totalorder %v2787_v23, %v2733_v9  ;;  %v1769_v59 = vsel %vm2844_vm7, 1.0, %v4118_v20  ;;  %v174_v44 = vld [vmem:[#allocation3 + $0x8] sm:$0xff] }
  0x2e   :  { %4172 = vst [vmem:[#allocation25_spill] sm:$0xff] %v2908_v55  ;;  %2141 = vmatprep.subr.msk.mxu0 %vm2796_vm5, %v2668_v18  ;;  %2170 = vmatpush3.msra.mxu1 %v303_v48  ;;  %v337_v60 = vsub.f32 %v2863_v43, %v2888_v51  ;;  %v2930_v61 = vand.u32 4294901760, %v2905_v54  ;;  %v2932_v62 = vsub.f32 %v1769_v59, %v1769_v59  ;;  %v1768_v63 = vsel %vm2872_vm8, 1.0, %v4118_v20 }
  0x2f   :  { %2142 = vmatpush3.msk.msra.mxu0 %vm2796_vm5, %v2668_v18  ;;  %2171 = vmatprep.subr.mxu1 %v310_v49  ;;  %v324_v0 = vand.u32 4294901760, %v323_v50  ;;  %v2940_v21 = vsub.f32 %v1768_v63, %v1768_v63  ;;  %v1767_v22 = vsel %vm2895_vm9, 1.0, %v4118_v20  ;;  %v2946_v27 = vadd.s32 8, %v2707_v1 }
  0x30   :  { %2143 = vmatprep.subr.msk.mxu0 %vm2810_vm6, %v2668_v18  ;;  %2172 = vmatpush3.msra.mxu1 %v310_v49  ;;  %v344_v30 = vsub.f32 %v2905_v54, %v2930_v61  ;;  %v2954_v35 = vand.u32 4294901760, %v2932_v62  ;;  %vm2958_vm12 = vcmp.eq.s32.totalorder %v2820_v31, %v2733_v9  ;;  %v2962_v40 = vsub.f32 %v1767_v22, %v1767_v22 }
  0x31   :  { %4175 = vst [vmem:[#allocation26_spill] sm:$0xff] %v2946_v27  ;;  %2144 = vmatpush3.msk.msra.mxu0 %vm2810_vm6, %v2668_v18  ;;  %2173 = vmatprep.subr.mxu1 %v317_v56  ;;  %v331_v47 = vand.u32 4294901760, %v330_v57  ;;  %v2968_v48 = vand.u32 4294901760, %v2940_v21  ;;  %v1766_v49 = vsel %vm2901_vm10, 1.0, %v4118_v20  ;;  %v1765_v50 = vsel %vm2917_vm11, 1.0, %v4118_v20 }
  0x32   :  { %2145 = vmatprep.subr.msk.mxu0 %vm2844_vm7, %v2668_v18  ;;  %2174 = vmatpush3.msra.mxu1 %v317_v56  ;;  %v338_v59 = vand.u32 4294901760, %v337_v60  ;;  %v351_v57 = vsub.f32 %v2932_v62, %v2954_v35  ;;  %vm2983_vm13 = vcmp.eq.s32.totalorder %v2908_v55, %v2733_v9  ;;  %v2987_v22 = vsub.f32 %v1766_v49, %v1766_v49 }
  0x33   :  { %2146 = vmatpush3.msk.msra.mxu0 %vm2844_vm7, %v2668_v18  ;;  %2175 = vmatprep.subr.mxu1 %v324_v0  ;;  %v2993_v20 = vand.u32 4294901760, %v2962_v40  ;;  %v2995_v56 = vsub.f32 %v1765_v50, %v1765_v50  ;;  %v2997_v60 = vand.u32 4294901760, %v173_v41  ;;  %v2999_v31 = vand.u32 4294901760, %v174_v44 }
  0x34   :  { %2147 = vmatprep.subr.msk.mxu0 %vm2872_vm8, %v2668_v18  ;;  %2176 = vmatpush3.msra.mxu1 %v324_v0  ;;  %v345_v49 = vand.u32 4294901760, %v344_v30  ;;  %vm3006_vm14 = vcmp.eq.s32.totalorder %v2946_v27, %v2733_v9  ;;  %v4182_v23 = vmov 0.0   ;;  %v358_v13 = vsub.f32 %v2940_v21, %v2968_v48 }
  0x35   :  { %v1764_v50 = vsel %vm2958_vm12, 1.0, %v4182_v23  ;;  %2148 = vmatpush3.msk.msra.mxu0 %vm2872_vm8, %v2668_v18  ;;  %2177 = vmatprep.subr.mxu1 %v331_v47  ;;  %v3019_v0 = vand.u32 4294901760, %v2987_v22  ;;  %v3022_v30 = vsub.f32 %v173_v41, %v2997_v60  ;;  %v3025_v27 = vsub.f32 %v174_v44, %v2999_v31 }
  0x36   :  { %2149 = vmatprep.subr.msk.mxu0 %vm2895_vm9, %v2668_v18  ;;  %2178 = vmatpush3.msra.mxu1 %v331_v47  ;;  %vm3032_vm15 = vcmp.eq.s32.totalorder %v2707_v1, %v2733_v9  ;;  %v3036_v11 = vsub.f32 %v1764_v50, %v1764_v50  ;;  %v1763_v41 = vsel %vm2983_vm13, 1.0, %v4182_v23  ;;  %v352_v44 = vand.u32 4294901760, %v351_v57 }
  0x37   :  { %2150 = vmatpush3.msk.msra.mxu0 %vm2895_vm9, %v2668_v18  ;;  %2179 = vmatprep.subr.mxu1 %v338_v59  ;;  %v365_v47 = vsub.f32 %v2962_v40, %v2993_v20  ;;  %v3047_v9 = vand.u32 4294901760, %v2995_v56  ;;  %v3053_v1 = vsub.f32 %v1763_v41, %v1763_v41  ;;  %v1762_v10 = vsel %vm3006_vm14, 1.0, %v4182_v23 }
  0x38   :  { %2151 = vmatprep.subr.msk.mxu0 %vm2901_vm10, %v2668_v18  ;;  %2180 = vmatpush3.msra.mxu1 %v338_v59  ;;  %v359_v57 = vand.u32 4294901760, %v358_v13  ;;  %v372_v8 = vsub.f32 %v2987_v22, %v3019_v0  ;;  %v1761_v59 = vsel %vm3032_vm15, 1.0, %v4182_v23  ;;  %v3071_v41 = vand.u32 4294901760, %v3036_v11 }
  0x39   :  { %2152 = vmatpush3.msk.msra.mxu0 %vm2901_vm10, %v2668_v18  ;;  %2181 = vmatprep.subr.mxu1 %v345_v49  ;;  %v3073_v50 = vsub.f32 %v1762_v10, %v1762_v10  ;;  %v366_v13 = vand.u32 4294901760, %v365_v47  ;;  %v379_v7 = vsub.f32 %v2995_v56, %v3047_v9  ;;  %v3087_v10 = vand.u32 4294901760, %v3053_v1 }
  0x3a   :  { %2153 = vmatprep.subr.msk.mxu0 %vm2917_vm11, %v2668_v18  ;;  %2182 = vmatpush3.msra.mxu1 %v345_v49  ;;  %v4185_v49 = vand.u32 4294901760, %v3022_v30  ;;  %v3089_v5 = vsub.f32 %v1761_v59, %v1761_v59  ;;  %v373_v47 = vand.u32 4294901760, %v372_v8  ;;  %v4186_v4 = vand.u32 4294901760, %v3025_v27 }
  0x3b   :  { %2154 = vmatpush3.msk.msra.mxu0 %vm2917_vm11, %v2668_v18  ;;  %2183 = vmatprep.subr.mxu1 %v352_v44  ;;  %v3103_v59 = vand.u32 4294901760, %v3073_v50  ;;  %v380_v8 = vand.u32 4294901760, %v379_v7 }
  0x3c   :  { %2155 = vmatprep.subr.msk.mxu0 %vm2958_vm12, %v2668_v18  ;;  %2184 = vmatpush3.msra.mxu1 %v352_v44  ;;  %v261_v6 = vsub.f32 %v3022_v30, %v4185_v49  ;;  %v271_v23 = vsub.f32 %v3025_v27, %v4186_v4  ;;  %v386_v44 = vsub.f32 %v3036_v11, %v3071_v41  ;;  %v3114_v49 = vand.u32 4294901760, %v3089_v5 }
  0x3d   :  { %2156 = vmatpush3.msk.msra.mxu0 %vm2958_vm12, %v2668_v18  ;;  %2185 = vmatprep.subr.mxu1 %v359_v57 }
  0x3e   :  { %2157 = vmatprep.subr.msk.mxu0 %vm2983_vm13, %v2668_v18  ;;  %2186 = vmatpush3.msra.mxu1 %v359_v57  ;;  %v262_v4 = vand.u32 4294901760, %v261_v6  ;;  %v393_v57 = vsub.f32 %v3053_v1, %v3087_v10  ;;  %v272_v3 = vand.u32 4294901760, %v271_v23  ;;  %v387_v7 = vand.u32 4294901760, %v386_v44 }
  0x3f   :  { %2158 = vmatpush3.msk.msra.mxu0 %vm2983_vm13, %v2668_v18  ;;  %2187 = vmatprep.subr.mxu1 %v366_v13  ;;  %v400_v6 = vsub.f32 %v3073_v50, %v3103_v59  ;;  %v407_v23 = vsub.f32 %v3089_v5, %v3114_v49 }
  0x40   :  { %2159 = vmatprep.subr.msk.mxu0 %vm3006_vm14, %v2668_v18  ;;  %2188 = vmatpush3.msra.mxu1 %v366_v13  ;;  %v394_v13 = vand.u32 4294901760, %v393_v57 }
  0x41   :  { %2160 = vmatpush3.msk.msra.mxu0 %vm3006_vm14, %v2668_v18  ;;  %2189 = vmatprep.subr.mxu1 %v373_v47  ;;  %v408_v44 = vand.u32 4294901760, %v407_v23  ;;  %v4216_v23 = vld [vmem:[#allocation21_spill] sm:$0xff] }
  0x42   :  { %2161 = vmatprep.subr.msk.mxu0 %vm3032_vm15, %v2668_v18  ;;  %2190 = vmatpush3.msra.mxu1 %v373_v47  ;;  %v401_v47 = vand.u32 4294901760, %v400_v6 }
  0x43   :  { %2162 = vmatpush3.msk.msra.mxu0 %vm3032_vm15, %v2668_v18  ;;  %2191 = vmatprep.subr.mxu1 %v380_v8 }
  0x44   :  { %2163 = vmatprep.mubr.f32.mxu0 %v262_v4  ;;  %2192 = vmatpush3.msra.mxu1 %v380_v8  ;;  %v175_v8 = vld [vmem:[#allocation3 + $0x10] sm:$0xff]  ;;  %v4213_v4 = vld [vmem:[#allocation20_spill] sm:$0xff] }
  0x45   :  { %2207 = vmatprep.subr.mxu0 %v2792_v24  ;;  %2164 = vmatmul.mubr.f32.vlgmr.msra.gmra.mxu0 %v272_v3  ;;  %v176_v3 = vld [vmem:[#allocation3 + $0x18] sm:$0xff] }
  0x46   :  { %2193 = vmatprep.subr.mxu1 %v387_v7  ;;  %2208 = vmatpush3.msra.mxu0 %v2792_v24  ;;  %v3138_v24 = vand.u32 4294901760, %v175_v8 }
  0x47   :  { %2194 = vmatpush3.msra.mxu1 %v387_v7  ;;  %2209 = vmatprep.subr.mxu0 %v2800_v26 }
  0x48   :  { %2195 = vmatprep.subr.mxu1 %v394_v13  ;;  %2210 = vmatpush3.msra.mxu0 %v2800_v26  ;;  %v3142_v26 = vand.u32 4294901760, %v176_v3 }
  0x49   :  { %2196 = vmatpush3.msra.mxu1 %v394_v13  ;;  %2211 = vmatprep.subr.mxu0 %v2814_v29 }
  0x4a   :  { %2197 = vmatprep.subr.mxu1 %v401_v47  ;;  %2212 = vmatpush3.msra.mxu0 %v2814_v29  ;;  %v3157_v29 = vsub.f32 %v175_v8, %v3138_v24 }
  0x4b   :  { %2198 = vmatpush3.msra.mxu1 %v401_v47  ;;  %2213 = vmatprep.subr.mxu0 %v2831_v34 }
  0x4c   :  { %2199 = vmatprep.subr.mxu1 %v408_v44  ;;  %2214 = vmatpush3.msra.mxu0 %v2831_v34  ;;  %v3164_v34 = vsub.f32 %v176_v3, %v3142_v26 }
  0x4d   :  { %2200 = vmatpush3.msra.mxu1 %v408_v44  ;;  %2201 = vmatprep.mubr.f32.mxu1 %v2997_v60 }
  0x4e   :  { %2215 = vmatprep.subr.mxu0 %v2848_v38  ;;  %2202 = vmatmul.mubr.f32.vlgmr.msra.gmra.mxu1 %v2999_v31 }
  0x4f   :  { %2216 = vmatpush3.msra.mxu0 %v2848_v38  ;;  %2245 = vmatprep.subr.msk.mxu1 %vm2749_vm0, %v2668_v18  ;;  %v280_v38 = vand.u32 4294901760, %v3157_v29 }
  0x50   :  { %2217 = vmatprep.subr.mxu0 %v2863_v43  ;;  %2246 = vmatpush3.msk.msra.mxu1 %vm2749_vm0, %v2668_v18 }
  0x51   :  { %2218 = vmatpush3.msra.mxu0 %v2863_v43  ;;  %2247 = vmatprep.subr.msk.mxu1 %vm2755_vm1, %v2668_v18  ;;  %v290_v43 = vand.u32 4294901760, %v3164_v34 }
  0x52   :  { %2219 = vmatprep.subr.mxu0 %v2905_v54  ;;  %2248 = vmatpush3.msk.msra.mxu1 %vm2755_vm1, %v2668_v18 }
  0x53   :  { %2220 = vmatpush3.msra.mxu0 %v2905_v54  ;;  %2249 = vmatprep.subr.msk.mxu1 %vm2761_vm2, %v2668_v18  ;;  %v281_v54 = vsub.f32 %v3157_v29, %v280_v38 }
  0x54   :  { %2221 = vmatprep.subr.mxu0 %v2932_v62  ;;  %2250 = vmatpush3.msk.msra.mxu1 %vm2761_vm2, %v2668_v18 }
  0x55   :  { %2222 = vmatpush3.msra.mxu0 %v2932_v62  ;;  %2251 = vmatprep.subr.msk.mxu1 %vm2767_vm3, %v2668_v18  ;;  %v291_v62 = vsub.f32 %v3164_v34, %v290_v43 }
  0x56   :  { %2223 = vmatprep.subr.mxu0 %v2940_v21  ;;  %2252 = vmatpush3.msk.msra.mxu1 %vm2767_vm3, %v2668_v18 }
  0x57   :  { %2224 = vmatpush3.msra.mxu0 %v2940_v21  ;;  %2253 = vmatprep.subr.msk.mxu1 %vm2776_vm4, %v2668_v18  ;;  %v282_v21 = vand.u32 4294901760, %v281_v54 }
  0x58   :  { %2225 = vmatprep.subr.mxu0 %v2962_v40  ;;  %2254 = vmatpush3.msk.msra.mxu1 %vm2776_vm4, %v2668_v18 }
  0x59   :  { %2226 = vmatpush3.msra.mxu0 %v2962_v40  ;;  %2255 = vmatprep.subr.msk.mxu1 %vm2796_vm5, %v2668_v18  ;;  %v292_v40 = vand.u32 4294901760, %v291_v62  ;;  %v4222_v62 = vld [vmem:[#allocation23_spill] sm:$0xff] }
  0x5a   :  { %2227 = vmatprep.subr.mxu0 %v2987_v22  ;;  %2256 = vmatpush3.msk.msra.mxu1 %vm2796_vm5, %v2668_v18 }
  0x5b   :  { %2228 = vmatpush3.msra.mxu0 %v2987_v22  ;;  %2257 = vmatprep.subr.msk.mxu1 %vm2810_vm6, %v2668_v18 }
  0x5c   :  { %2229 = vmatprep.subr.mxu0 %v2995_v56  ;;  %2258 = vmatpush3.msk.msra.mxu1 %vm2810_vm6, %v2668_v18 }
  0x5d   :  { %2230 = vmatpush3.msra.mxu0 %v2995_v56  ;;  %2259 = vmatprep.subr.msk.mxu1 %vm2844_vm7, %v2668_v18 }
  0x5e   :  { %2231 = vmatprep.subr.mxu0 %v3036_v11  ;;  %2260 = vmatpush3.msk.msra.mxu1 %vm2844_vm7, %v2668_v18 }
  0x5f   :  { %2232 = vmatpush3.msra.mxu0 %v3036_v11  ;;  %2261 = vmatprep.subr.msk.mxu1 %vm2872_vm8, %v2668_v18  ;;  %v3347_v11 = vld [vmem:[%s4115_s3] ss:$0 sm:$0xff] }
  0x60   :  { %2233 = vmatprep.subr.mxu0 %v3053_v1  ;;  %2262 = vmatpush3.msk.msra.mxu1 %vm2872_vm8, %v2668_v18 }
  0x61   :  { %2166 = vmatprep.mubr.f32.mxu0 %v282_v21  ;;  %2234 = vmatpush3.msra.mxu0 %v3053_v1  ;;  %v4187_v1 = vand.u32 4294901760, %v3022_v30 }
  0x62   :  { %2263 = vmatprep.subr.msk.mxu1 %vm2895_vm9, %v2668_v18  ;;  %2167 = vmatmul.mubr.f32.gmra.mxu0 %v292_v40 }
  0x63   :  { %2235 = vmatprep.subr.mxu0 %v3073_v50  ;;  %2264 = vmatpush3.msk.msra.mxu1 %vm2895_vm9, %v2668_v18 }
  0x64   :  { %2236 = vmatpush3.msra.mxu0 %v3073_v50  ;;  %2265 = vmatprep.subr.msk.mxu1 %vm2901_vm10, %v2668_v18 }
  0x65   :  { %2237 = vmatprep.subr.mxu0 %v3089_v5  ;;  %2266 = vmatpush3.msk.msra.mxu1 %vm2901_vm10, %v2668_v18 }
  0x66   :  { %2238 = vmatpush3.msra.mxu0 %v3089_v5  ;;  %2239 = vmatprep.mubr.f32.mxu0 %v3022_v30  ;;  %v4188_v5 = vand.u32 4294901760, %v3025_v27  ;;  %v4210_v30 = vld [vmem:[#allocation19_spill] sm:$0xff] }
  0x67   :  { %2267 = vmatprep.subr.msk.mxu1 %vm2917_vm11, %v2668_v18  ;;  %2240 = vmatmul.mubr.f32.vlgmr.msra.gmra.mxu0 %v3025_v27 }
  0x68   :  { %2268 = vmatpush3.msk.msra.mxu1 %vm2917_vm11, %v2668_v18  ;;  %2283 = vmatprep.subr.mxu0 %v2826_v32 }
  0x69   :  { %2204 = vmatprep.mubr.f32.mxu1 %v3138_v24  ;;  %2269 = vmatprep.subr.msk.mxu1 %vm2958_vm12, %v2668_v18 }
  0x6a   :  { %2284 = vmatpush3.msra.mxu0 %v2826_v32  ;;  %2205 = vmatmul.mubr.f32.gmra.mxu1 %v3142_v26  ;;  %v4198_v32 = vld [vmem:[#allocation15_spill] sm:$0xff] }
  0x6b   :  { %2270 = vmatpush3.msk.msra.mxu1 %vm2958_vm12, %v2668_v18  ;;  %2285 = vmatprep.subr.mxu0 %v2829_v33 }
  0x6c   :  { %2242 = vmatprep.mubr.f32.mxu0 %v3157_v29  ;;  %2271 = vmatprep.subr.msk.mxu1 %vm2983_vm13, %v2668_v18  ;;  %v4219_v29 = vld [vmem:[#allocation22_spill] sm:$0xff] }
  0x6d   :  { %2286 = vmatpush3.msra.mxu0 %v2829_v33  ;;  %2272 = vmatpush3.msk.msra.mxu1 %vm2983_vm13, %v2668_v18 }
  0x6e   :  { %2243 = vmatmul.mubr.f32.gmra.mxu0 %v3164_v34  ;;  %2287 = vmatprep.subr.mxu0 %v2840_v36 }
  0x6f   :  { %2273 = vmatprep.subr.msk.mxu1 %vm3006_vm14, %v2668_v18  ;;  %2288 = vmatpush3.msra.mxu0 %v2840_v36 }
  0x70   :  { %2274 = vmatpush3.msk.msra.mxu1 %vm3006_vm14, %v2668_v18  ;;  %2289 = vmatprep.subr.mxu0 %v2861_v42 }
  0x71   :  { %2275 = vmatprep.subr.msk.mxu1 %vm3032_vm15, %v2668_v18  ;;  %2290 = vmatpush3.msra.mxu0 %v2861_v42  ;;  %v4201_v42 = vld [vmem:[#allocation16_spill] sm:$0xff] }
  0x72   :  { %2276 = vmatpush3.msk.msra.mxu1 %vm3032_vm15, %v2668_v18  ;;  %2277 = vmatprep.mubr.f32.mxu1 %v4187_v1  ;;  %v947_v1 = vld [vmem:[#allocation6] sm:$0xff] }
  0x73   :  { %2291 = vmatprep.subr.mxu0 %v2877_v46  ;;  %2278 = vmatmul.mubr.f32.vlgmr.msra.gmra.mxu1 %v4188_v5 }
  0x74   :  { %2292 = vmatpush3.msra.mxu0 %v2877_v46  ;;  %2321 = vmatprep.subr.msk.mxu1 %vm2749_vm0, %v2668_v18 }
  0x75   :  { %2293 = vmatprep.subr.mxu0 %v2888_v51  ;;  %2322 = vmatpush3.msk.msra.mxu1 %vm2749_vm0, %v2668_v18  ;;  %vm3363_vm0 = vcmp.eq.s32.totalorder %v2710_v2, %v3347_v11  ;;  %v4194_v2 = vmov 0.0  }
  0x76   :  { %2294 = vmatpush3.msra.mxu0 %v2888_v51  ;;  %2323 = vmatprep.subr.msk.mxu1 %vm2755_vm1, %v2668_v18  ;;  %v1793_v17 = vsel %vm3363_vm0, 1.0, %v4194_v2  ;;  %v4204_v51 = vld [vmem:[#allocation17_spill] sm:$0xff] }
  0x77   :  { %2280 = vmatprep.mubr.f32.mxu1 %v280_v38  ;;  %2295 = vmatprep.subr.mxu0 %v2930_v61  ;;  %v3409_v28 = vsub.f32 %v1793_v17, %v1793_v17  ;;  %v948_v17 = vld [vmem:[#allocation6 + $0x8] sm:$0xff] }
  0x78   :  { %2324 = vmatpush3.msk.msra.mxu1 %vm2755_vm1, %v2668_v18  ;;  %2296 = vmatpush3.msra.mxu0 %v2930_v61  ;;  %vm3377_vm1 = vcmp.eq.s32.totalorder %v4191_v15, %v3347_v11 }
  0x79   :  { %2281 = vmatmul.mubr.f32.gmra.mxu1 %v290_v43  ;;  %2325 = vmatprep.subr.msk.mxu1 %vm2761_vm2, %v2668_v18  ;;  %v1792_v25 = vsel %vm3377_vm1, 1.0, %v4194_v2  ;;  %v3443_v46 = vand.u32 4294901760, %v3409_v28 }
  0x7a   :  { %2297 = vmatprep.subr.mxu0 %v2954_v35  ;;  %2326 = vmatpush3.msk.msra.mxu1 %vm2761_vm2, %v2668_v18  ;;  %vm3398_vm2 = vcmp.eq.s32.totalorder %v4195_v19, %v3347_v11  ;;  %v3425_v36 = vsub.f32 %v1792_v25, %v1792_v25 }
  0x7b   :  { %2298 = vmatpush3.msra.mxu0 %v2954_v35  ;;  %2327 = vmatprep.subr.msk.mxu1 %vm2767_vm3, %v2668_v18  ;;  %v1791_v37 = vsel %vm3398_vm2, 1.0, %v4194_v2  ;;  %v1076_v39 = vsub.f32 %v3409_v28, %v3443_v46 }
  0x7c   :  { %2299 = vmatprep.subr.mxu0 %v2968_v48  ;;  %2328 = vmatpush3.msk.msra.mxu1 %vm2767_vm3, %v2668_v18  ;;  %vm3417_vm3 = vcmp.eq.s32.totalorder %v4198_v32, %v3347_v11  ;;  %v3460_v61 = vsub.f32 %v1791_v37, %v1791_v37  ;;  %v3469_v27 = vand.u32 4294901760, %v3425_v36 }
  0x7d   :  { %2300 = vmatpush3.msra.mxu0 %v2968_v48  ;;  %2329 = vmatprep.subr.msk.mxu1 %vm2776_vm4, %v2668_v18  ;;  %v1790_v53 = vsel %vm3417_vm3, 1.0, %v4194_v2 }
  0x7e   :  { %2301 = vmatprep.subr.mxu0 %v2993_v20  ;;  %2330 = vmatpush3.msk.msra.mxu1 %vm2776_vm4, %v2668_v18  ;;  %vm3434_vm4 = vcmp.eq.s32.totalorder %v4201_v42, %v3347_v11  ;;  %v3486_v22 = vsub.f32 %v1790_v53, %v1790_v53  ;;  %v1083_v63 = vsub.f32 %v3425_v36, %v3469_v27  ;;  %v3645_v53 = vand.u32 4294901760, %v947_v1 }
  0x7f   :  { %2302 = vmatpush3.msra.mxu0 %v2993_v20  ;;  %2331 = vmatprep.subr.msk.mxu1 %vm2796_vm5, %v2668_v18  ;;  %v1789_v48 = vsel %vm3434_vm4, 1.0, %v4194_v2 }
  0x80   :  { %2303 = vmatprep.subr.mxu0 %v3019_v0  ;;  %2332 = vmatpush3.msk.msra.mxu1 %vm2796_vm5, %v2668_v18  ;;  %vm3447_vm5 = vcmp.eq.s32.totalorder %v4204_v51, %v3347_v11  ;;  %v3512_v50 = vsub.f32 %v1789_v48, %v1789_v48  ;;  %v1084_v44 = vand.u32 4294901760, %v1083_v63 }
  0x81   :  { %2304 = vmatpush3.msra.mxu0 %v3019_v0  ;;  %2333 = vmatprep.subr.msk.mxu1 %vm2810_vm6, %v2668_v18  ;;  %v1788_v56 = vsel %vm3447_vm5, 1.0, %v4194_v2  ;;  %v3504_v0 = vand.u32 4294901760, %v3460_v61 }
  0x82   :  { %2305 = vmatprep.subr.mxu0 %v3047_v9  ;;  %2334 = vmatpush3.msk.msra.mxu1 %vm2810_vm6, %v2668_v18  ;;  %vm3473_vm6 = vcmp.eq.s32.totalorder %v4207_v58, %v3347_v11  ;;  %v3560_v13 = vand.u32 4294901760, %v3512_v50 }
  0x83   :  { %2306 = vmatpush3.msra.mxu0 %v3047_v9  ;;  %2335 = vmatprep.subr.msk.mxu1 %vm2844_vm7, %v2668_v18  ;;  %v1090_v55 = vsub.f32 %v3460_v61, %v3504_v0 }
  0x84   :  { %2307 = vmatprep.subr.mxu0 %v3071_v41  ;;  %2336 = vmatpush3.msk.msra.mxu1 %vm2844_vm7, %v2668_v18  ;;  %vm3508_vm7 = vcmp.eq.s32.totalorder %v4210_v30, %v3347_v11  ;;  %v1104_v54 = vsub.f32 %v3512_v50, %v3560_v13 }
  0x85   :  { %2308 = vmatpush3.msra.mxu0 %v3071_v41  ;;  %2337 = vmatprep.subr.msk.mxu1 %vm2872_vm8, %v2668_v18  ;;  %v1787_v41 = vsel %vm3473_vm6, 1.0, %v4194_v2  ;;  %v1786_v6 = vsel %vm3508_vm7, 1.0, %v4194_v2  ;;  %v1091_v43 = vand.u32 4294901760, %v1090_v55 }
  0x86   :  { %2309 = vmatprep.subr.mxu0 %v3087_v10  ;;  %2338 = vmatpush3.msk.msra.mxu1 %vm2872_vm8, %v2668_v18  ;;  %vm3536_vm8 = vcmp.eq.s32.totalorder %v4213_v4, %v3347_v11  ;;  %v3546_v7 = vsub.f32 %v1787_v41, %v1787_v41  ;;  %v3590_v34 = vsub.f32 %v1786_v6, %v1786_v6  ;;  %v1105_v58 = vand.u32 4294901760, %v1104_v54  ;;  %v4228_v41 = vld [vmem:[#allocation25_spill] sm:$0xff]  ;;  %v4234_v54 = vld [vmem:[#allocation12_spill] sm:$0xff] }
  0x87   :  { %2310 = vmatpush3.msra.mxu0 %v3087_v10  ;;  %2339 = vmatprep.subr.msk.mxu1 %vm2895_vm9, %v2668_v18  ;;  %v3523_v10 = vsub.f32 %v1788_v56, %v1788_v56  ;;  %v1785_v3 = vsel %vm3536_vm8, 1.0, %v4194_v2 }
  0x88   :  { %2311 = vmatprep.subr.mxu0 %v3103_v59  ;;  %2340 = vmatpush3.msk.msra.mxu1 %vm2895_vm9, %v2668_v18  ;;  %vm3564_vm9 = vcmp.eq.s32.totalorder %v4216_v23, %v3347_v11  ;;  %v3596_v38 = vand.u32 4294901760, %v3546_v7  ;;  %v3612_v40 = vsub.f32 %v1785_v3, %v1785_v3  ;;  %v3627_v25 = vand.u32 4294901760, %v3590_v34  ;;  %v4231_v23 = vld [vmem:[#allocation26_spill] sm:$0xff] }
  0x89   :  { %2312 = vmatpush3.msra.mxu0 %v3103_v59  ;;  %2341 = vmatprep.subr.msk.mxu1 %vm2901_vm10, %v2668_v18  ;;  %v3532_v59 = vand.u32 4294901760, %v3486_v22  ;;  %v3573_v8 = vand.u32 4294901760, %v3523_v10  ;;  %v3687_v3 = vsub.f32 %v947_v1, %v3645_v53 }
  0x8a   :  { %2313 = vmatprep.subr.mxu0 %v3114_v49  ;;  %2342 = vmatpush3.msk.msra.mxu1 %vm2901_vm10, %v2668_v18  ;;  %vm3586_vm10 = vcmp.eq.s32.totalorder %v4219_v29, %v3347_v11  ;;  %v1118_v37 = vsub.f32 %v3546_v7, %v3596_v38  ;;  %v3649_v48 = vand.u32 4294901760, %v3612_v40 }
  0x8b   :  { %2314 = vmatpush3.msra.mxu0 %v3114_v49  ;;  %2315 = vmatprep.mubr.f32.mxu0 %v2997_v60  ;;  %v1077_v49 = vand.u32 4294901760, %v1076_v39  ;;  %v1097_v12 = vsub.f32 %v3486_v22, %v3532_v59  ;;  %v1111_v5 = vsub.f32 %v3523_v10, %v3573_v8  ;;  %v1783_v15 = vsel %vm3586_vm10, 1.0, %v4194_v2 }
  0x8c   :  { %2343 = vmatprep.subr.msk.mxu1 %vm2917_vm11, %v2668_v18  ;;  %2316 = vmatmul.mubr.f32.vlgmr.msra.gmra.mxu0 %v2999_v31  ;;  %v3651_v56 = vsub.f32 %v1783_v15, %v1783_v15  ;;  %v3653_v39 = vand.u32 4294901760, %v948_v17  ;;  %v1119_v55 = vand.u32 4294901760, %v1118_v37 }
  0x8d   :  { %2344 = vmatpush3.msk.msra.mxu1 %vm2917_vm11, %v2668_v18  ;;  %2359 = vmatprep.subr.msk.mxu0 %vm3363_vm0, %v2668_v18  ;;  %vm3608_vm11 = vcmp.eq.s32.totalorder %v4222_v62, %v3347_v11  ;;  %v1098_v19 = vand.u32 4294901760, %v1097_v12  ;;  %v1112_v30 = vand.u32 4294901760, %v1111_v5  ;;  %v1132_v12 = vsub.f32 %v3612_v40, %v3649_v48 }
  0x8e   :  { %2345 = vmatprep.subr.msk.mxu1 %vm2958_vm12, %v2668_v18  ;;  %2360 = vmatpush3.msk.msra.mxu0 %vm3363_vm0, %v2668_v18  ;;  %v1782_v51 = vsel %vm3608_vm11, 1.0, %v4194_v2  ;;  %v3695_v29 = vand.u32 4294901760, %v3651_v56 }
  0x8f   :  { %2346 = vmatpush3.msk.msra.mxu1 %vm2958_vm12, %v2668_v18  ;;  %2361 = vmatprep.subr.msk.mxu0 %vm3377_vm1, %v2668_v18 }
  0x90   :  { %2318 = vmatprep.mubr.f32.mxu0 %v3138_v24  ;;  %2347 = vmatprep.subr.msk.mxu1 %vm2983_vm13, %v2668_v18 }
  0x91   :  { %2362 = vmatpush3.msk.msra.mxu0 %vm3377_vm1, %v2668_v18  ;;  %2348 = vmatpush3.msk.msra.mxu1 %vm2983_vm13, %v2668_v18  ;;  %vm3660_vm13 = vcmp.eq.s32.totalorder %v4228_v41, %v3347_v11 }
  0x92   :  { %2319 = vmatmul.mubr.f32.gmra.mxu0 %v3142_v26  ;;  %2363 = vmatprep.subr.msk.mxu0 %vm3398_vm2, %v2668_v18 }
  0x93   :  { %2349 = vmatprep.subr.msk.mxu1 %vm3006_vm14, %v2668_v18  ;;  %2364 = vmatpush3.msk.msra.mxu0 %vm3398_vm2, %v2668_v18 }
  0x94   :  { %2350 = vmatpush3.msk.msra.mxu1 %vm3006_vm14, %v2668_v18  ;;  %2365 = vmatprep.subr.msk.mxu0 %vm3417_vm3, %v2668_v18  ;;  %vm3682_vm14 = vcmp.eq.s32.totalorder %v4231_v23, %v3347_v11 }
  0x95   :  { %2351 = vmatprep.subr.msk.mxu1 %vm3032_vm15, %v2668_v18  ;;  %2366 = vmatpush3.msk.msra.mxu0 %vm3417_vm3, %v2668_v18 }
  0x96   :  { %2352 = vmatpush3.msk.msra.mxu1 %vm3032_vm15, %v2668_v18  ;;  %2353 = vmatprep.mubr.f32.mxu1 %v2997_v60  ;;  %vm3708_vm15 = vcmp.eq.s32.totalorder %v4234_v54, %v3347_v11 }
  0x97   :  { %2367 = vmatprep.subr.msk.mxu0 %vm3434_vm4, %v2668_v18  ;;  %2354 = vmatmul.mubr.f32.vlgmr.msra.gmra.mxu1 %v2999_v31  ;;  %v1784_v31 = vsel %vm3564_vm9, 1.0, %v4194_v2  ;;  %v1778_v41 = vsel %vm3708_vm15, 1.0, %v4194_v2 }
  0x98   :  { %2368 = vmatpush3.msk.msra.mxu0 %vm3434_vm4, %v2668_v18  ;;  %2397 = vmatprep.subr.mxu1 %v1077_v49  ;;  %v3629_v32 = vsub.f32 %v1784_v31, %v1784_v31  ;;  %v3698_v31 = vsub.f32 %v948_v17, %v3653_v39 }
  0x99   :  { %2369 = vmatprep.subr.msk.mxu0 %vm3447_vm5, %v2668_v18  ;;  %2398 = vmatpush3.msra.mxu1 %v1077_v49  ;;  %v3672_v49 = vsub.f32 %v1782_v51, %v1782_v51  ;;  %v1146_v51 = vsub.f32 %v3651_v56, %v3695_v29 }
  0x9a   :  { %2370 = vmatpush3.msk.msra.mxu0 %vm3447_vm5, %v2668_v18  ;;  %2399 = vmatprep.subr.mxu1 %v1084_v44  ;;  %v3670_v4 = vand.u32 4294901760, %v3629_v32 }
  0x9b   :  { %2356 = vmatprep.mubr.f32.mxu1 %v3138_v24  ;;  %2371 = vmatprep.subr.msk.mxu0 %vm3473_vm6, %v2668_v18  ;;  %v4225_v24 = vld [vmem:[#allocation24_spill] sm:$0xff]  ;;  %v3720_v17 = vand.u32 4294901760, %v3672_v49 }
  0x9c   :  { %2400 = vmatpush3.msra.mxu1 %v1084_v44  ;;  %2372 = vmatpush3.msk.msra.mxu0 %vm3473_vm6, %v2668_v18  ;;  %vm3638_vm12 = vcmp.eq.s32.totalorder %v4225_v24, %v3347_v11  ;;  %v1139_v15 = vsub.f32 %v3629_v32, %v3670_v4  ;;  %v1779_v11 = vsel %vm3682_vm14, 1.0, %v4194_v2  ;;  %v1133_v24 = vand.u32 4294901760, %v1132_v12 }
  0x9d   :  { %2357 = vmatmul.mubr.f32.gmra.mxu1 %v3142_v26  ;;  %2401 = vmatprep.subr.mxu1 %v1091_v43  ;;  %v1125_v26 = vsub.f32 %v3590_v34, %v3627_v25  ;;  %v1781_v6 = vsel %vm3638_vm12, 1.0, %v4194_v2  ;;  %v1153_v23 = vsub.f32 %v3672_v49, %v3720_v17  ;;  %v3762_v12 = vsub.f32 %v1778_v41, %v1778_v41 }
  0x9e   :  { %2373 = vmatprep.subr.msk.mxu0 %vm3508_vm7, %v2668_v18  ;;  %2402 = vmatpush3.msra.mxu1 %v1091_v43  ;;  %v1780_v43 = vsel %vm3660_vm13, 1.0, %v4194_v2  ;;  %v3712_v1 = vsub.f32 %v1781_v6, %v1781_v6  ;;  %v1140_v6 = vand.u32 4294901760, %v1139_v15 }
  0x9f   :  { %2374 = vmatpush3.msk.msra.mxu0 %vm3508_vm7, %v2668_v18  ;;  %2403 = vmatprep.subr.mxu1 %v1098_v19  ;;  %v1126_v5 = vand.u32 4294901760, %v1125_v26  ;;  %v3729_v37 = vsub.f32 %v1780_v43, %v1780_v43  ;;  %v3746_v26 = vsub.f32 %v1779_v11, %v1779_v11  ;;  %v1147_v43 = vand.u32 4294901760, %v1146_v51 }
  0xa0   :  { %2375 = vmatprep.subr.msk.mxu0 %vm3536_vm8, %v2668_v18  ;;  %2404 = vmatpush3.msra.mxu1 %v1098_v19  ;;  %v1034_v19 = vand.u32 4294901760, %v3687_v3  ;;  %v1154_v11 = vand.u32 4294901760, %v1153_v23  ;;  %v3787_v41 = vand.u32 4294901760, %v3762_v12 }
  0xa1   :  { %2376 = vmatpush3.msk.msra.mxu0 %vm3536_vm8, %v2668_v18  ;;  %2405 = vmatprep.subr.mxu1 %v1105_v58  ;;  %v3776_v15 = vand.u32 4294901760, %v3746_v26 }
  0xa2   :  { %2377 = vmatprep.subr.msk.mxu0 %vm3564_vm9, %v2668_v18  ;;  %2406 = vmatpush3.msra.mxu1 %v1105_v58  ;;  %v4136_v58 = vand.u32 4294901760, %v3698_v31  ;;  %v1035_v2 = vsub.f32 %v3687_v3, %v1034_v19 }
  0xa3   :  { %2378 = vmatpush3.msk.msra.mxu0 %vm3564_vm9, %v2668_v18  ;;  %2407 = vmatprep.subr.mxu1 %v1112_v30 }
  0xa4   :  { %2379 = vmatprep.subr.msk.mxu0 %vm3586_vm10, %v2668_v18  ;;  %2408 = vmatpush3.msra.mxu1 %v1112_v30  ;;  %v3744_v30 = vand.u32 4294901760, %v3712_v1  ;;  %v1045_v54 = vsub.f32 %v3698_v31, %v4136_v58  ;;  %v1036_v51 = vand.u32 4294901760, %v1035_v2 }
  0xa5   :  { %2380 = vmatpush3.msk.msra.mxu0 %vm3586_vm10, %v2668_v18  ;;  %2409 = vmatprep.subr.mxu1 %v1119_v55 }
  0xa6   :  { %2381 = vmatprep.subr.msk.mxu0 %vm3608_vm11, %v2668_v18  ;;  %2410 = vmatpush3.msra.mxu1 %v1119_v55  ;;  %v3760_v55 = vand.u32 4294901760, %v3729_v37  ;;  %v1046_v58 = vand.u32 4294901760, %v1045_v54  ;;  %v1181_v54 = vsub.f32 %v3762_v12, %v3787_v41 }
  0xa7   :  { %2382 = vmatpush3.msk.msra.mxu0 %vm3608_vm11, %v2668_v18  ;;  %2411 = vmatprep.subr.mxu1 %v1126_v5 }
  0xa8   :  { %2383 = vmatprep.subr.msk.mxu0 %vm3638_vm12, %v2668_v18  ;;  %2412 = vmatpush3.msra.mxu1 %v1126_v5  ;;  %v1160_v5 = vsub.f32 %v3712_v1, %v3744_v30 }
  0xa9   :  { %2384 = vmatpush3.msk.msra.mxu0 %vm3638_vm12, %v2668_v18  ;;  %2413 = vmatprep.subr.mxu1 %v1133_v24 }
  0xaa   :  { %2385 = vmatprep.subr.msk.mxu0 %vm3660_vm13, %v2668_v18  ;;  %2414 = vmatpush3.msra.mxu1 %v1133_v24  ;;  %v1167_v24 = vsub.f32 %v3729_v37, %v3760_v55  ;;  %v1161_v23 = vand.u32 4294901760, %v1160_v5  ;;  %v1182_v5 = vand.u32 4294901760, %v1181_v54 }
  0xab   :  { %2386 = vmatpush3.msk.msra.mxu0 %vm3660_vm13, %v2668_v18  ;;  %2415 = vmatprep.subr.mxu1 %v1140_v6 }
  0xac   :  { %2387 = vmatprep.subr.msk.mxu0 %vm3682_vm14, %v2668_v18  ;;  %2416 = vmatpush3.msra.mxu1 %v1140_v6  ;;  %v1174_v6 = vsub.f32 %v3746_v26, %v3776_v15  ;;  %v1168_v2 = vand.u32 4294901760, %v1167_v24 }
  0xad   :  { %2388 = vmatpush3.msk.msra.mxu0 %vm3682_vm14, %v2668_v18  ;;  %2417 = vmatprep.subr.mxu1 %v1147_v43 }
  0xae   :  { %2389 = vmatprep.subr.msk.mxu0 %vm3708_vm15, %v2668_v18  ;;  %2418 = vmatpush3.msra.mxu1 %v1147_v43  ;;  %v1175_v43 = vand.u32 4294901760, %v1174_v6 }
  0xaf   :  { %2390 = vmatpush3.msk.msra.mxu0 %vm3708_vm15, %v2668_v18  ;;  %2419 = vmatprep.subr.mxu1 %v1154_v11 }
  0xb0   :  { %2391 = vmatprep.mubr.f32.mxu0 %v1036_v51  ;;  %2420 = vmatpush3.msra.mxu1 %v1154_v11  ;;  %v949_v11 = vld [vmem:[#allocation6 + $0x10] sm:$0xff] }
  0xb1   :  { %2435 = vmatprep.subr.mxu0 %v3409_v28  ;;  %2392 = vmatmul.mubr.f32.vlgmr.msra.gmra.mxu0 %v1046_v58  ;;  %v950_v58 = vld [vmem:[#allocation6 + $0x18] sm:$0xff] }
  0xb2   :  { %2421 = vmatprep.subr.mxu1 %v1161_v23  ;;  %2436 = vmatpush3.msra.mxu0 %v3409_v28  ;;  %v3811_v28 = vand.u32 4294901760, %v949_v11 }
  0xb3   :  { %2422 = vmatpush3.msra.mxu1 %v1161_v23  ;;  %2437 = vmatprep.subr.mxu0 %v3425_v36 }
  0xb4   :  { %2423 = vmatprep.subr.mxu1 %v1168_v2  ;;  %2438 = vmatpush3.msra.mxu0 %v3425_v36  ;;  %v3815_v36 = vand.u32 4294901760, %v950_v58 }
  0xb5   :  { %2424 = vmatpush3.msra.mxu1 %v1168_v2  ;;  %2439 = vmatprep.subr.mxu0 %v3460_v61 }
  0xb6   :  { %2425 = vmatprep.subr.mxu1 %v1175_v43  ;;  %2440 = vmatpush3.msra.mxu0 %v3460_v61  ;;  %v3830_v61 = vsub.f32 %v949_v11, %v3811_v28 }
  0xb7   :  { %2426 = vmatpush3.msra.mxu1 %v1175_v43  ;;  %2441 = vmatprep.subr.mxu0 %v3486_v22 }
  0xb8   :  { %2427 = vmatprep.subr.mxu1 %v1182_v5  ;;  %2442 = vmatpush3.msra.mxu0 %v3486_v22  ;;  %v3837_v22 = vsub.f32 %v950_v58, %v3815_v36 }
  0xb9   :  { %2428 = vmatpush3.msra.mxu1 %v1182_v5  ;;  %2429 = vmatprep.mubr.f32.mxu1 %v3645_v53 }
  0xba   :  { %2443 = vmatprep.subr.mxu0 %v3512_v50  ;;  %2430 = vmatmul.mubr.f32.vlgmr.msra.gmra.mxu1 %v3653_v39 }
  0xbb   :  { %2444 = vmatpush3.msra.mxu0 %v3512_v50  ;;  %2473 = vmatprep.subr.msk.mxu1 %vm3363_vm0, %v2668_v18  ;;  %v1054_v50 = vand.u32 4294901760, %v3830_v61 }
  0xbc   :  { %2445 = vmatprep.subr.mxu0 %v3523_v10  ;;  %2474 = vmatpush3.msk.msra.mxu1 %vm3363_vm0, %v2668_v18 }
  0xbd   :  { %2446 = vmatpush3.msra.mxu0 %v3523_v10  ;;  %2475 = vmatprep.subr.msk.mxu1 %vm3377_vm1, %v2668_v18  ;;  %v1064_v10 = vand.u32 4294901760, %v3837_v22 }
  0xbe   :  { %2447 = vmatprep.subr.mxu0 %v3546_v7  ;;  %2476 = vmatpush3.msk.msra.mxu1 %vm3377_vm1, %v2668_v18 }
  0xbf   :  { %2448 = vmatpush3.msra.mxu0 %v3546_v7  ;;  %2477 = vmatprep.subr.msk.mxu1 %vm3398_vm2, %v2668_v18  ;;  %v1055_v7 = vsub.f32 %v3830_v61, %v1054_v50 }
  0xc0   :  { %2449 = vmatprep.subr.mxu0 %v3590_v34  ;;  %2478 = vmatpush3.msk.msra.mxu1 %vm3398_vm2, %v2668_v18 }
  0xc1   :  { %2450 = vmatpush3.msra.mxu0 %v3590_v34  ;;  %2479 = vmatprep.subr.msk.mxu1 %vm3417_vm3, %v2668_v18  ;;  %v1065_v34 = vsub.f32 %v3837_v22, %v1064_v10 }
  0xc2   :  { %2451 = vmatprep.subr.mxu0 %v3612_v40  ;;  %2480 = vmatpush3.msk.msra.mxu1 %vm3417_vm3, %v2668_v18 }
  0xc3   :  { %2452 = vmatpush3.msra.mxu0 %v3612_v40  ;;  %2481 = vmatprep.subr.msk.mxu1 %vm3434_vm4, %v2668_v18  ;;  %v1056_v40 = vand.u32 4294901760, %v1055_v7 }
  0xc4   :  { %2453 = vmatprep.subr.mxu0 %v3629_v32  ;;  %2482 = vmatpush3.msk.msra.mxu1 %vm3434_vm4, %v2668_v18 }
  0xc5   :  { %2454 = vmatpush3.msra.mxu0 %v3629_v32  ;;  %2483 = vmatprep.subr.msk.mxu1 %vm3447_vm5, %v2668_v18  ;;  %v1066_v32 = vand.u32 4294901760, %v1065_v34 }
  0xc6   :  { %2455 = vmatprep.subr.mxu0 %v3651_v56  ;;  %2484 = vmatpush3.msk.msra.mxu1 %vm3447_vm5, %v2668_v18 }
  0xc7   :  { %2456 = vmatpush3.msra.mxu0 %v3651_v56  ;;  %2485 = vmatprep.subr.msk.mxu1 %vm3473_vm6, %v2668_v18 }
  0xc8   :  { %2457 = vmatprep.subr.mxu0 %v3672_v49  ;;  %2486 = vmatpush3.msk.msra.mxu1 %vm3473_vm6, %v2668_v18 }
  0xc9   :  { %2458 = vmatpush3.msra.mxu0 %v3672_v49  ;;  %2487 = vmatprep.subr.msk.mxu1 %vm3508_vm7, %v2668_v18 }
  0xca   :  { %2459 = vmatprep.subr.mxu0 %v3712_v1  ;;  %2488 = vmatpush3.msk.msra.mxu1 %vm3508_vm7, %v2668_v18 }
  0xcb   :  { %2460 = vmatpush3.msra.mxu0 %v3712_v1  ;;  %2489 = vmatprep.subr.msk.mxu1 %vm3536_vm8, %v2668_v18 }
  0xcc   :  { %2461 = vmatprep.subr.mxu0 %v3729_v37  ;;  %2490 = vmatpush3.msk.msra.mxu1 %vm3536_vm8, %v2668_v18 }
  0xcd   :  { %2394 = vmatprep.mubr.f32.mxu0 %v1056_v40  ;;  %2462 = vmatpush3.msra.mxu0 %v3729_v37 }
  0xce   :  { %2491 = vmatprep.subr.msk.mxu1 %vm3564_vm9, %v2668_v18  ;;  %2395 = vmatmul.mubr.f32.gmra.mxu0 %v1066_v32 }
  0xcf   :  { %2463 = vmatprep.subr.mxu0 %v3746_v26  ;;  %2492 = vmatpush3.msk.msra.mxu1 %vm3564_vm9, %v2668_v18 }
  0xd0   :  { %2464 = vmatpush3.msra.mxu0 %v3746_v26  ;;  %2493 = vmatprep.subr.msk.mxu1 %vm3586_vm10, %v2668_v18 }
  0xd1   :  { %2465 = vmatprep.subr.mxu0 %v3762_v12  ;;  %2494 = vmatpush3.msk.msra.mxu1 %vm3586_vm10, %v2668_v18 }
  0xd2   :  { %2466 = vmatpush3.msra.mxu0 %v3762_v12  ;;  %2467 = vmatprep.mubr.f32.mxu0 %v3687_v3 }
  0xd3   :  { %2495 = vmatprep.subr.msk.mxu1 %vm3608_vm11, %v2668_v18  ;;  %2468 = vmatmul.mubr.f32.vlgmr.msra.gmra.mxu0 %v3698_v31 }
  0xd4   :  { %2496 = vmatpush3.msk.msra.mxu1 %vm3608_vm11, %v2668_v18  ;;  %2511 = vmatprep.subr.mxu0 %v3443_v46 }
  0xd5   :  { %2432 = vmatprep.mubr.f32.mxu1 %v3811_v28  ;;  %2497 = vmatprep.subr.msk.mxu1 %vm3638_vm12, %v2668_v18 }
  0xd6   :  { %2512 = vmatpush3.msra.mxu0 %v3443_v46  ;;  %2433 = vmatmul.mubr.f32.gmra.mxu1 %v3815_v36  ;;  %v4237_v46 = vand.u32 4294901760, %v3698_v31 }
  0xd7   :  { %2498 = vmatpush3.msk.msra.mxu1 %vm3638_vm12, %v2668_v18  ;;  %2513 = vmatprep.subr.mxu0 %v3469_v27 }
  0xd8   :  { %2470 = vmatprep.mubr.f32.mxu0 %v3830_v61  ;;  %2499 = vmatprep.subr.msk.mxu1 %vm3660_vm13, %v2668_v18 }
  0xd9   :  { %2514 = vmatpush3.msra.mxu0 %v3469_v27  ;;  %2500 = vmatpush3.msk.msra.mxu1 %vm3660_vm13, %v2668_v18 }
  0xda   :  { %2471 = vmatmul.mubr.f32.gmra.mxu0 %v3837_v22  ;;  %2515 = vmatprep.subr.mxu0 %v3504_v0 }
  0xdb   :  { %2501 = vmatprep.subr.msk.mxu1 %vm3682_vm14, %v2668_v18  ;;  %2516 = vmatpush3.msra.mxu0 %v3504_v0 }
  0xdc   :  { %2502 = vmatpush3.msk.msra.mxu1 %vm3682_vm14, %v2668_v18  ;;  %2517 = vmatprep.subr.mxu0 %v3532_v59 }
  0xdd   :  { %2503 = vmatprep.subr.msk.mxu1 %vm3708_vm15, %v2668_v18  ;;  %2518 = vmatpush3.msra.mxu0 %v3532_v59 }
  0xde   :  { %2504 = vmatpush3.msk.msra.mxu1 %vm3708_vm15, %v2668_v18  ;;  %2505 = vmatprep.mubr.f32.mxu1 %v1034_v19 }
  0xdf   :  { %2519 = vmatprep.subr.mxu0 %v3560_v13  ;;  %2506 = vmatmul.mubr.f32.vlgmr.msra.gmra.mxu1 %v4237_v46 }
  0xe0   :  { %2520 = vmatpush3.msra.mxu0 %v3560_v13  ;;  %2549 = vmatprep.subr.msk.mxu1 %vm3363_vm0, %v2668_v18 }
  0xe1   :  { %2521 = vmatprep.subr.mxu0 %v3573_v8  ;;  %2550 = vmatpush3.msk.msra.mxu1 %vm3363_vm0, %v2668_v18 }
  0xe2   :  { %2522 = vmatpush3.msra.mxu0 %v3573_v8  ;;  %2551 = vmatprep.subr.msk.mxu1 %vm3377_vm1, %v2668_v18 }
  0xe3   :  { %2508 = vmatprep.mubr.f32.mxu1 %v1054_v50  ;;  %2523 = vmatprep.subr.mxu0 %v3596_v38 }
  0xe4   :  { %2552 = vmatpush3.msk.msra.mxu1 %vm3377_vm1, %v2668_v18  ;;  %2524 = vmatpush3.msra.mxu0 %v3596_v38 }
  0xe5   :  { %2509 = vmatmul.mubr.f32.gmra.mxu1 %v1064_v10  ;;  %2553 = vmatprep.subr.msk.mxu1 %vm3398_vm2, %v2668_v18 }
  0xe6   :  { %2525 = vmatprep.subr.mxu0 %v3627_v25  ;;  %2554 = vmatpush3.msk.msra.mxu1 %vm3398_vm2, %v2668_v18 }
  0xe7   :  { %2526 = vmatpush3.msra.mxu0 %v3627_v25  ;;  %2555 = vmatprep.subr.msk.mxu1 %vm3417_vm3, %v2668_v18 }
  0xe8   :  { %2527 = vmatprep.subr.mxu0 %v3649_v48  ;;  %2556 = vmatpush3.msk.msra.mxu1 %vm3417_vm3, %v2668_v18 }
  0xe9   :  { %2528 = vmatpush3.msra.mxu0 %v3649_v48  ;;  %2557 = vmatprep.subr.msk.mxu1 %vm3434_vm4, %v2668_v18 }
  0xea   :  { %2529 = vmatprep.subr.mxu0 %v3670_v4  ;;  %2558 = vmatpush3.msk.msra.mxu1 %vm3434_vm4, %v2668_v18 }
  0xeb   :  { %2530 = vmatpush3.msra.mxu0 %v3670_v4  ;;  %2559 = vmatprep.subr.msk.mxu1 %vm3447_vm5, %v2668_v18 }
  0xec   :  { %2531 = vmatprep.subr.mxu0 %v3695_v29  ;;  %2560 = vmatpush3.msk.msra.mxu1 %vm3447_vm5, %v2668_v18 }
  0xed   :  { %2532 = vmatpush3.msra.mxu0 %v3695_v29  ;;  %2561 = vmatprep.subr.msk.mxu1 %vm3473_vm6, %v2668_v18 }
  0xee   :  { %2533 = vmatprep.subr.mxu0 %v3720_v17  ;;  %2562 = vmatpush3.msk.msra.mxu1 %vm3473_vm6, %v2668_v18 }
  0xef   :  { %2534 = vmatpush3.msra.mxu0 %v3720_v17  ;;  %2563 = vmatprep.subr.msk.mxu1 %vm3508_vm7, %v2668_v18 }
  0xf0   :  { %2535 = vmatprep.subr.mxu0 %v3744_v30  ;;  %2564 = vmatpush3.msk.msra.mxu1 %vm3508_vm7, %v2668_v18 }
  0xf1   :  { %2536 = vmatpush3.msra.mxu0 %v3744_v30  ;;  %2565 = vmatprep.subr.msk.mxu1 %vm3536_vm8, %v2668_v18 }
  0xf2   :  { %2537 = vmatprep.subr.mxu0 %v3760_v55  ;;  %2566 = vmatpush3.msk.msra.mxu1 %vm3536_vm8, %v2668_v18 }
  0xf3   :  { %2538 = vmatpush3.msra.mxu0 %v3760_v55  ;;  %2567 = vmatprep.subr.msk.mxu1 %vm3564_vm9, %v2668_v18 }
  0xf4   :  { %2539 = vmatprep.subr.mxu0 %v3776_v15  ;;  %2568 = vmatpush3.msk.msra.mxu1 %vm3564_vm9, %v2668_v18 }
  0xf5   :  { %2540 = vmatpush3.msra.mxu0 %v3776_v15  ;;  %2569 = vmatprep.subr.msk.mxu1 %vm3586_vm10, %v2668_v18 }
  0xf6   :  { %2541 = vmatprep.subr.mxu0 %v3787_v41  ;;  %2570 = vmatpush3.msk.msra.mxu1 %vm3586_vm10, %v2668_v18 }
  0xf7   :  { %2542 = vmatpush3.msra.mxu0 %v3787_v41  ;;  %2543 = vmatprep.mubr.f32.mxu0 %v3645_v53 }
  0xf8   :  { %2571 = vmatprep.subr.msk.mxu1 %vm3608_vm11, %v2668_v18  ;;  %2544 = vmatmul.mubr.f32.vlgmr.msra.gmra.mxu0 %v3653_v39 }
  0xf9   :  { %2572 = vmatpush3.msk.msra.mxu1 %vm3608_vm11, %v2668_v18  ;;  %2546 = vmatprep.mubr.f32.mxu0 %v3811_v28 }
  0xfa   :  { %2573 = vmatprep.subr.msk.mxu1 %vm3638_vm12, %v2668_v18  ;;  %2581 = vmatprep.mubr.f32.mxu1 %v3645_v53 }
  0xfb   :  { %2574 = vmatpush3.msk.msra.mxu1 %vm3638_vm12, %v2668_v18 }
  0xfc   :  { %2575 = vmatprep.subr.msk.mxu1 %vm3660_vm13, %v2668_v18  ;;  %2547 = vmatmul.mubr.f32.gmra.mxu0 %v3815_v36 }
  0xfd   :  { %2576 = vmatpush3.msk.msra.mxu1 %vm3660_vm13, %v2668_v18 }
  0xfe   :  { %2577 = vmatprep.subr.msk.mxu1 %vm3682_vm14, %v2668_v18 }
  0xff   :  { %2578 = vmatpush3.msk.msra.mxu1 %vm3682_vm14, %v2668_v18 }
 0x100   :  { %2579 = vmatprep.subr.msk.mxu1 %vm3708_vm15, %v2668_v18 }
 0x101   :  { %2580 = vmatpush3.msk.msra.mxu1 %vm3708_vm15, %v2668_v18 }
 0x102   :  { %2582 = vmatmul.mubr.f32.vlgmr.msra.gmra.mxu1 %v3653_v39 }
 0x103   :  { %2584 = vmatprep.mubr.f32.mxu1 %v3811_v28 }
 0x105   :  { %v2165_v14 = vpop.f32.mrf.mxu0 }
 0x106   :  { %2585 = vmatmul.mubr.f32.gmra.mxu1 %v3815_v36 }
 0x107   :  { %v264_v16 = vpop.f32.mrf.mxu0 }
 0x10e   :  { %v2203_v45 = vpop.f32.mrf.mxu1 }
 0x10f   :  { %v452_v41 = vadd.f32 %v2203_v45, %v2165_v14 }
 0x110   :  { %v445_v27 = vpop.f32.mrf.mxu1 }
 0x111   :  { %v446_v55 = vadd.f32 %v445_v27, %v264_v16 }
 0x122   :  { %v2168_v20 = vpop.f32.mrf.mxu0 }
 0x124   :  { %v284_v33 = vpop.f32.mrf.mxu0 }
 0x127   :  { %v2241_v52 = vpop.f32.mrf.mxu0 }
 0x128   :  { %v575_v11 = vadd.f32 %v2241_v52, %v452_v41 }
 0x129   :  { %v567_v35 = vpop.f32.mrf.mxu0 }
 0x12a   :  { %v2206_v0 = vpop.f32.mrf.mxu1  ;;  %v568_v23 = vadd.f32 %v567_v35, %v446_v55 }
 0x12b   :  { %v464_v58 = vadd.f32 %v2206_v0, %v2168_v20 }
 0x12c   :  { %v457_v59 = vpop.f32.mrf.mxu1 }
 0x12d   :  { %v458_v6 = vadd.f32 %v457_v59, %v284_v33 }
 0x12e   :  { %v2244_v9 = vpop.f32.mrf.mxu0 }
 0x12f   :  { %v589_v33 = vadd.f32 %v2244_v9, %v464_v58 }
 0x130   :  { %v581_v57 = vpop.f32.mrf.mxu0 }
 0x131   :  { %v582_v10 = vadd.f32 %v581_v57, %v458_v6 }
 0x133   :  { %v2279_v13 = vpop.f32.mrf.mxu1 }
 0x134   :  { %v686_v7 = vadd.f32 %v2279_v13, %v575_v11 }
 0x135   :  { %v677_v47 = vpop.f32.mrf.mxu1 }
 0x136   :  { %v678_v28 = vadd.f32 %v677_v47, %v568_v23 }
 0x139   :  { %v2282_v60 = vpop.f32.mrf.mxu1 }
 0x13b   :  { %v693_v21 = vpop.f32.mrf.mxu1 }
 0x13c   :  { %v694_v45 = vadd.f32 %v693_v21, %v582_v10 }
 0x14c   :  { %v2317_v18 = vpop.f32.mrf.mxu0 }
 0x14d   :  { %v827_v27 = vadd.f32 %v2317_v18, %v686_v7 }
 0x14e   :  { %v820_v8 = vpop.f32.mrf.mxu0 }
 0x14f   :  { %v821_v34 = vadd.f32 %v820_v8, %v678_v28 }
 0x152   :  { %v4100_v38 = vpop.f32.mrf.mxu0 }
 0x154   :  { %v832_v25 = vpop.f32.mrf.mxu0 }
 0x157   :  { %v2355_v42 = vpop.f32.mrf.mxu1 }
 0x158   :  { %v932_v13 = vadd.f32 %v2355_v42, %v827_v27 }
 0x159   :  { %v925_v48 = vpop.f32.mrf.mxu1 }
 0x15a   :  { %v926_v35 = vadd.f32 %v925_v48, %v821_v34 }
 0x15d   :  { %v4102_v39 = vpop.f32.mrf.mxu1 }
 0x15f   :  { %v937_v4 = vpop.f32.mrf.mxu1 }
 0x171   :  { %v2393_v53 = vpop.f32.mrf.mxu0 }
 0x173   :  { %v1038_v56 = vpop.f32.mrf.mxu0 }
 0x17a   :  { %v2431_v44 = vpop.f32.mrf.mxu1 }
 0x17b   :  { %v1226_v51 = vadd.f32 %v2431_v44, %v2393_v53 }
 0x17c   :  { %v1219_v29 = vpop.f32.mrf.mxu1 }
 0x17d   :  { %v1220_v24 = vadd.f32 %v1219_v29, %v1038_v56  ;;  %v702_v56 = vadd.f32 %v2282_v60, %v589_v33 }
 0x18e   :  { %v2396_v63 = vpop.f32.mrf.mxu0 }
 0x190   :  { %v1058_v49 = vpop.f32.mrf.mxu0 }
 0x193   :  { %v2469_v3 = vpop.f32.mrf.mxu0 }
 0x194   :  { %v1349_v2 = vadd.f32 %v2469_v3, %v1226_v51  ;;  %v839_v3 = vadd.f32 %v4100_v38, %v702_v56  ;;  %v1735_v38 = vstv %s4116_s4 }
 0x195   :  { %v1341_v62 = vpop.f32.mrf.mxu0 }
 0x196   :  { %v2434_v31 = vpop.f32.mrf.mxu1  ;;  %v1342_v43 = vadd.f32 %v1341_v62, %v1220_v24 }
 0x197   :  { %v1238_v54 = vadd.f32 %v2434_v31, %v2396_v63  ;;  %v833_v63 = vadd.f32 %v832_v25, %v694_v45  ;;  %v944_v31 = vadd.f32 %v4102_v39, %v839_v3 }
 0x198   :  { %v1231_v1 = vpop.f32.mrf.mxu1 }
 0x199   :  { %v1232_v5 = vadd.f32 %v1231_v1, %v1058_v49  ;;  %v938_v9 = vadd.f32 %v937_v4, %v833_v63 }
 0x19a   :  { %v2472_v17 = vpop.f32.mrf.mxu0 }
 0x19b   :  { %v1363_v32 = vadd.f32 %v2472_v17, %v1238_v54 }
 0x19c   :  { %v1355_v37 = vpop.f32.mrf.mxu0 }
 0x19d   :  { %v1356_v46 = vadd.f32 %v1355_v37, %v1232_v5 }
 0x19f   :  { %v2507_v19 = vpop.f32.mrf.mxu1 }
 0x1a0   :  { %v1460_v22 = vadd.f32 %v2507_v19, %v1349_v2 }
 0x1a1   :  { %v1451_v30 = vpop.f32.mrf.mxu1 }
 0x1a2   :  { %v1452_v50 = vadd.f32 %v1451_v30, %v1342_v43 }
 0x1a5   :  { %v2510_v12 = vpop.f32.mrf.mxu1 }
 0x1a6   :  { %v1476_v20 = vadd.f32 %v2510_v12, %v1363_v32 }
 0x1a7   :  { %v1467_v36 = vpop.f32.mrf.mxu1 }
 0x1a8   :  { %v1468_v0 = vadd.f32 %v1467_v36, %v1356_v46 }
 0x1b8   :  { %v2545_v26 = vpop.f32.mrf.mxu0 }
 0x1b9   :  { %v1601_v14 = vadd.f32 %v2545_v26, %v1460_v22 }
 0x1ba   :  { %v1594_v15 = vpop.f32.mrf.mxu0 }
 0x1bb   :  { %v1595_v16 = vadd.f32 %v1594_v15, %v1452_v50 }
 0x1bc   :  { %v2548_v61 = vpop.f32.mrf.mxu0 }
 0x1bd   :  { %v1613_v8 = vadd.f32 %v2548_v61, %v1476_v20 }
 0x1be   :  { %v1606_v59 = vpop.f32.mrf.mxu0 }
 0x1bf   :  { %v1607_v49 = vadd.f32 %v1606_v59, %v1468_v0 }
 0x1c2   :  { %v2583_v40 = vpop.f32.mrf.mxu1 }
 0x1c3   :  { %v1706_v47 = vadd.f32 %v2583_v40, %v1601_v14 }
 0x1c4   :  { %v1699_v52 = vpop.f32.mrf.mxu1 }
 0x1c5   :  { %v1700_v53 = vadd.f32 %v1699_v52, %v1595_v16  ;;  %v1722_v21 = vmul.f32 %v1706_v47, %v932_v13 }
 0x1c6   :  { %v2586_v57 = vpop.f32.mrf.mxu1 }
 0x1c7   :  { %v1721_v44 = vmul.f32 %v1700_v53, %v926_v35  ;;  %v1718_v18 = vadd.f32 %v2586_v57, %v1613_v8 }
 0x1c8   :  { %v1711_v29 = vpop.f32.mrf.mxu1 }
 0x1c9   :  { %v1712_v48 = vadd.f32 %v1711_v29, %v1607_v49  ;;  %v1725_v62 = vadd.f32 %v1722_v21, %v1721_v44  ;;  %v1724_v17 = vmul.f32 %v1718_v18, %v944_v31 }
 0x1cb   :  { %v1723_v1 = vmul.f32 %v1712_v48, %v938_v9 }
 0x1cd   :  { %v1726_v19 = vadd.f32 %v1725_v62, %v1723_v1 }
 0x1cf   :  { %v1727_v60 = vadd.f32 %v1726_v19, %v1724_v17 }
 0x1d1   :  { %v1728_v25 = vrot.slane %v1727_v60, 4 }
 0x1d3   :  { %v1729_v37 = vadd.f32 %v1728_v25, %v1727_v60 }
 0x1d5   :  { %v1730_v42 = vrot.slane %v1729_v37, 2 }
 0x1d7   :  { %v1731_v30 = vadd.f32 %v1730_v42, %v1729_v37 }
 0x1d9   :  { %v1732_v26 = vrot.slane %v1731_v30, 1 }
 0x1db   :  { %v1733_v4 = vadd.f32 %v1732_v26, %v1731_v30 }
 0x1dd   :  { %v1736_v55 = vadd.f32 %v1735_v38, %v1733_v4 }
 0x1df   :  { %v1890_v12 = vmul.f32 -1.442695, %v1736_v55 }
 0x1e1   :  { %2594 = vpow2.f32 %v1890_v12 }
 0x1ee   :  { %v2595_v15 = vpop.eup %2594 }
 0x1ef   :  { %v1740_v39 = vadd.f32 1.0, %v2595_v15 }
 0x1f1   :  { %2596 = vrcp.f32 %v1740_v39 }
 0x1fe   :  { %v2597_v51 = vpop.eup %2596 }
 0x1ff   :  { %1743 = vst [vmem:[#allocation8] sm:$0x1] %v2597_v51 }
 0x200   :  { %2649 = shalt.err (!%p2646_p0)
}
 0x201   :  { %1753 = dma.vmem_to_hbm [thread:$0]  %s1751_s8, 16, %s4117_s5, [#allocation5]  }
 0x202   :  { %2662 = dma.done.wait [#allocation5], 16  }
 0x203   :  { %2663 = vsyncadd [#allocation5], 4294967280 }
 0x204   :  { %1757 = vsyncpa [#allocation4], 1 }
 0x205   :  { %1758 = vsyncpa [#allocation7], 1 }
 0x206   :  { %1759 = vsyncpa [#allocation5], 1 }

</bundles_post_ra>
